<compile_context>
chip_gen: v7x
topology: tpu7x:2x2x1
jax: 0.10.0
libtpu: 0.0.40
codegen_flags: <defaults>
</compile_context>

<pallas_src>
import math

import jax
import jax.numpy as jnp
from jax.experimental import pallas as pl
from jax.experimental.pallas import tpu as pltpu


_MXU_DTYPE = jnp.bfloat16  # MXU operand dtype (accumulation is always f32).


def _ceil_div(a, b):
    return -(-a // b)


# ----------------------------------------------------------------------------
# DFT matrices (angles via integer mod so large H/W keep full precision)
# ----------------------------------------------------------------------------
def _rdft_w_matrix(w):
    """Stacked [C_W | S_W] with only the first W//2+1 frequency columns.

    Hermitian-symmetry weights are folded into the columns: 2 for interior
    frequencies, 1 for DC and (even W) Nyquist, 0 for the sublane-alignment
    padding columns.  Returns (matrix (W, 2*wr_pad) in _MXU_DTYPE, wr_pad).
    """
    wr = w // 2 + 1
    wr_pad = _ceil_div(wr, 8) * 8
    k = jnp.arange(w, dtype=jnp.int32)
    kw = jnp.arange(wr_pad, dtype=jnp.int32)
    kk = (k[:, None] * kw[None, :]) % w
    ang = (2.0 * jnp.pi / float(w)) * kk.astype(jnp.float32)
    c, s = jnp.cos(ang), jnp.sin(ang)
    wt = jnp.where(kw == 0, 1.0, 2.0)
    if w % 2 == 0:
        wt = jnp.where(kw == w // 2, 1.0, wt)
    wt = jnp.where(kw >= wr, 0.0, wt)  # zero the alignment padding columns
    c = c * wt[None, :]
    s = s * wt[None, :]
    return jnp.concatenate([c, s], axis=1).astype(_MXU_DTYPE), wr_pad


def _dft_h_matrices(h):
    """Full cos / sin H-point DFT matrices (H, H) in _MXU_DTYPE."""
    k = jnp.arange(h, dtype=jnp.int32)
    kk = (k[:, None] * k[None, :]) % h
    ang = (2.0 * jnp.pi / float(h)) * kk.astype(jnp.float32)
    return jnp.cos(ang).astype(_MXU_DTYPE), jnp.sin(ang).astype(_MXU_DTYPE)


# ----------------------------------------------------------------------------
# VMEM budgeting
# ----------------------------------------------------------------------------
def _vmem_limit_bytes():
    """Per-generation scoped-VMEM limit (conservative default if unknown)."""
    try:
        cap = int(pltpu.get_tpu_info().vmem_capacity_bytes)
    except Exception:
        cap = 0
    if cap >= 100 * 1024 * 1024:       # v5e / v6e class: 128 MiB physical
        return 96 * 1024 * 1024
    return 48 * 1024 * 1024            # v7x class (64 MiB physical) / unknown


# ----------------------------------------------------------------------------
# Kernel
# ----------------------------------------------------------------------------
def _fft_l1_kernel(pred_ref, targ_ref, csw_ref, chc_ref, chs_ref, out_ref, acc_ref):
    g = pl.program_id(1)

    @pl.when(g == 0)
    def _init():
        acc_ref[...] = jnp.zeros_like(acc_ref)

    tn, hh, ww = pred_ref.shape
    wr2 = csw_ref.shape[1]
    wr = wr2 // 2

    # FFT linearity: |fft(pred) - fft(target)| == |fft(pred - target)|.
    d = pred_ref[...].astype(jnp.float32) - targ_ref[...].astype(jnp.float32)

    # Stage A: rfft-style 1-D DFT along W for every row of every image, one
    # MXU matmul (Hermitian x2 weights are pre-folded into csw columns).
    d_mx = d.astype(_MXU_DTYPE).reshape(tn * hh, ww)
    a = jnp.dot(d_mx, csw_ref[...], preferred_element_type=jnp.float32)  # (tn*H, 2*wr)

    # Corner turn in the MXU dtype (half the XLU bytes of an f32 transpose).
    a_mx = a.astype(_MXU_DTYPE).reshape(tn, hh, wr2)
    at = jnp.swapaxes(a_mx, 1, 2).reshape(tn * wr2, hh)                  # (tn*2wr, H)

    # Stage B: 1-D DFT along H; cos and sin as separate matmuls so the
    # quadrant slices below only cut the sublane axis at wr (a multiple of 8)
    # and never cut the lane axis.
    rc = jnp.dot(at, chc_ref[...], preferred_element_type=jnp.float32).reshape(tn, wr2, hh)
    rs = jnp.dot(at, chs_ref[...], preferred_element_type=jnp.float32).reshape(tn, wr2, hh)

    q_cc = rc[:, :wr, :]   # (C_H d C_W)^T
    q_cs = rc[:, wr:, :]   # (C_H d S_W)^T
    q_sc = rs[:, :wr, :]   # (S_H d C_W)^T
    q_ss = rs[:, wr:, :]   # (S_H d S_W)^T

    # real = CC - SS ; imag = -(SC + CS); the sign is dropped under abs.
    vals = jnp.abs(q_cc - q_ss) + jnp.abs(q_sc + q_cs)                   # (tn, wr, H)

    # Batch-axis reduction only (elementwise VPU adds into the vector scratch);
    # the single cross-lane reduction / lane-sparse store happen at the end.
    acc_ref[...] += jnp.sum(vals, axis=0)

    @pl.when(g == pl.num_programs(1) - 1)
    def _flush():
        out_ref[...] = jnp.sum(acc_ref[...], keepdims=True)[None]


# ----------------------------------------------------------------------------
# Host-side driver
# ----------------------------------------------------------------------------
def _fft_l1_sum(p, t):
    """Sum over all images of (|Re fft2(d)| + |Im fft2(d)|), d = p - t."""
    n, h, w = p.shape
    in_bytes = p.dtype.itemsize

    csw, wr_pad = _rdft_w_matrix(w)       # (W, 2*wr_pad)
    ch_c, ch_s = _dft_h_matrices(h)       # (H, H) each

    vmem_limit = _vmem_limit_bytes()
    # DFT matrices (double-buffered by the pipeline) + the f32 accumulator.
    const_bytes = 2 * 2 * (csw.size + ch_c.size + ch_s.size) + wr_pad * h * 4
    budget = max(int(vmem_limit * 0.8) - const_bytes, 1)
    # Live bytes per image per step: 2 inputs x 2 pipeline buffers x H*W*in_bytes
    # plus ~40*H*W bytes of f32/bf16 intermediates (d, a, a^T, rc, rs, vals).
    per_image = h * w * (4 * in_bytes + 40)
    tn = max(1, min(n, 256, budget // per_image))
    # TODO(synk): for very large single images (per_image > budget) an
    # additional W/column tiling of the DFT would be needed; not implemented.

    if n <= tn:
        tn, nc, gi = n, 1, 1
    else:
        nc = 2                                   # split steps across 2 TCs (v7x)
        steps = _ceil_div(_ceil_div(n, tn), nc) * nc
        gi = steps // nc
        tn = _ceil_div(n, steps)                 # shrink tn -> minimal padding
    n_pad = nc * gi * tn

    if n_pad > n:
        # Pad BOTH tensors identically with zeros: d = 0 for padded images, so
        # they contribute nothing to the sum (mean still uses the original N).
        p = jnp.concatenate([p, jnp.zeros((n_pad - n, h, w), p.dtype)], axis=0)
        t = jnp.concatenate([t, jnp.zeros((n_pad - n, h, w), t.dtype)], axis=0)

    # TODO(synk): pltpu.CORE_PARALLEL on the leading axis (and
    # pipeline_mode=pl.Buffered(1) on the grid-invariant DFT-matrix specs)
    # would further guarantee dual-TC sharding / reclaim VMEM at huge H/W.
    partial = pl.pallas_call(
        _fft_l1_kernel,
        out_shape=jax.ShapeDtypeStruct((nc, 1, 1), jnp.float32),
        grid=(nc, gi),
        in_specs=[
            pl.BlockSpec((tn, h, w), lambda c, g: (c * gi + g, 0, 0)),     # pred
            pl.BlockSpec((tn, h, w), lambda c, g: (c * gi + g, 0, 0)),     # target
            pl.BlockSpec((w, 2 * wr_pad), lambda c, g: (0, 0)),            # [C_W|S_W]
            pl.BlockSpec((h, h), lambda c, g: (0, 0)),                     # C_H
            pl.BlockSpec((h, h), lambda c, g: (0, 0)),                     # S_H
        ],
        out_specs=pl.BlockSpec((1, 1, 1), lambda c, g: (c, 0, 0)),
        scratch_shapes=[pltpu.VMEM((wr_pad, h), jnp.float32)],
        compiler_params=pltpu.CompilerParams(
            dimension_semantics=("parallel", "arbitrary"),
            vmem_limit_bytes=vmem_limit,
        ),
    )(p, t, csw, ch_c, ch_s)
    return jnp.sum(partial)


# ----------------------------------------------------------------------------
# Public wrapper: FFTLoss.forward (weight=None)
# ----------------------------------------------------------------------------
def fft_loss(pred, target, loss_weight=1.0, reduction="mean"):
    """Pallas implementation of FFTLoss.forward for reduction in {'mean','sum'}."""
    if reduction not in ("mean", "sum"):
        # TODO(synk): reduction='none' (the full elementwise (..., H, W, 2)
        # |diff| tensor) is not implemented.
        raise ValueError(f"Unsupported reduction mode: {reduction}")
    # TODO(synk): optional element-wise `weight` argument (default None in the
    # PyTorch module) is not implemented.

    *lead, h, w = pred.shape
    n = int(math.prod(lead)) if lead else 1
    # No dtype up-cast in the wrapper: the original dtype is DMA'd; casts
    # happen in-kernel right before the MXU.
    p = pred.reshape(n, h, w)
    t = target.reshape(n, h, w)

    total = _fft_l1_sum(p, t)

    if reduction == "mean":
        # mean over the stacked (real, imag) tensor: N*H*W*2 elements.
        total = total / (n * h * w * 2)
    return loss_weight * total


def _reference(pred, target, loss_weight=1.0):
    pf = jnp.fft.fft2(pred, axes=(-2, -1))
    tf = jnp.fft.fft2(target, axes=(-2, -1))
    pf = jnp.stack([pf.real, pf.imag], axis=-1)
    tf = jnp.stack([tf.real, tf.imag], axis=-1)
    return loss_weight * jnp.mean(jnp.abs(pf - tf))


if __name__ == "__main__":
    key = jax.random.PRNGKey(0)
    k1, k2 = jax.random.split(key)
    B, C, H, W = 2, 4, 16, 16
    pred = jax.random.normal(k1, (B, C, H, W), dtype=jnp.float32)
    target = jax.random.normal(k2, (B, C, H, W), dtype=jnp.float32)

    loss = fft_loss(pred, target, loss_weight=1.0, reduction="mean")
    loss = jax.block_until_ready(loss)

    ref = _reference(pred, target, loss_weight=1.0)
    # Tolerance accounts for the bf16 MXU operands (f32 accumulation); the
    # observed drift is ~1e-3 relative or less.
    assert jnp.allclose(loss, ref, rtol=1e-2, atol=1e-3), (loss, ref)

    print("KERNEL_OK")
</pallas_src>

<mosaic_0001>
module attributes {stable_mosaic.version = 11 : i64} {
  func.func @_fft_l1_kernel(%arg0: i32, %arg1: i32, %arg2: memref<8x16x16xf32, #tpu.memory_space<vmem>>, %arg3: memref<8x16x16xf32, #tpu.memory_space<vmem>>, %arg4: memref<16x32xbf16, #tpu.memory_space<vmem>>, %arg5: memref<16x16xbf16, #tpu.memory_space<vmem>>, %arg6: memref<16x16xbf16, #tpu.memory_space<vmem>>, %arg7: memref<1x1x1xf32, #tpu.memory_space<vmem>>, %arg8: memref<16x16xf32, #tpu.memory_space<vmem>>) attributes {dimension_semantics = [#tpu.dimension_semantics<parallel>, #tpu.dimension_semantics<arbitrary>], iteration_bounds = array<i64: 1, 1>, scalar_prefetch = 0 : i64, scratch_operands = 1 : i64, tpu.core_type = #tpu.core_type<tc>, window_params = [{transform_indices = @transform_0, window_bounds = array<i64: 8, 16, 16>}, {transform_indices = @transform_1, window_bounds = array<i64: 8, 16, 16>}, {pipeline_mode = #tpu.pipeline_mode<synchronous>, transform_indices = @transform_2, window_bounds = array<i64: 16, 32>}, {pipeline_mode = #tpu.pipeline_mode<synchronous>, transform_indices = @transform_3, window_bounds = array<i64: 16, 16>}, {pipeline_mode = #tpu.pipeline_mode<synchronous>, transform_indices = @transform_4, window_bounds = array<i64: 16, 16>}, {transform_indices = @transform_5, window_bounds = array<i64: 1, 1, 1>}]} {
    %c0_i32 = arith.constant 0 : i32
    %0 = arith.cmpi eq, %arg1, %c0_i32 : i32
    %1 = arith.extui %0 : i1 to i32
    %c0_i32_0 = arith.constant 0 : i32
    %2 = arith.cmpi ne, %1, %c0_i32_0 : i32
    scf.if %2 {
      %cst_21 = arith.constant 0.000000e+00 : f32
      %36 = vector.broadcast %cst_21 : f32 to vector<16x16xf32>
      %c0_22 = arith.constant 0 : index
      %c0_23 = arith.constant 0 : index
      %37 = vector.load %arg8[%c0_22, %c0_23] : memref<16x16xf32, #tpu.memory_space<vmem>>, vector<16x16xf32>
      tpu.vector_store %arg8[%c0_22, %c0_23], %36 {strides = array<i32>} : memref<16x16xf32, #tpu.memory_space<vmem>>, vector<16x16xf32>,
    } else {
    }
    %c0 = arith.constant 0 : index
    %c0_1 = arith.constant 0 : index
    %c0_2 = arith.constant 0 : index
    %3 = vector.load %arg2[%c0, %c0_1, %c0_2] : memref<8x16x16xf32, #tpu.memory_space<vmem>>, vector<8x16x16xf32>
    %c0_3 = arith.constant 0 : index
    %c0_4 = arith.constant 0 : index
    %c0_5 = arith.constant 0 : index
    %4 = vector.load %arg3[%c0_3, %c0_4, %c0_5] : memref<8x16x16xf32, #tpu.memory_space<vmem>>, vector<8x16x16xf32>
    %5 = arith.subf %3, %4 : vector<8x16x16xf32>
    %6 = arith.truncf %5 : vector<8x16x16xf32> to vector<8x16x16xbf16>
    %7 = vector.shape_cast %6 : vector<8x16x16xbf16> to vector<128x16xbf16>
    %c0_6 = arith.constant 0 : index
    %c0_7 = arith.constant 0 : index
    %8 = vector.load %arg4[%c0_6, %c0_7] : memref<16x32xbf16, #tpu.memory_space<vmem>>, vector<16x32xbf16>
    %cst = arith.constant dense<0.000000e+00> : vector<128x32xf32>
    %9 = tpu.matmul %7, %8, %cst {dimension_numbers = #tpu.dot_dimension_numbers<[1], [0], [0], [1], [0, 0, 1, 1], [], []>} : vector<128x16xbf16>, vector<16x32xbf16>, vector<128x32xf32> -> vector<128x32xf32>
    %10 = arith.truncf %9 : vector<128x32xf32> to vector<128x32xbf16>
    %11 = vector.shape_cast %10 : vector<128x32xbf16> to vector<8x16x32xbf16>
    %12 = tpu.transpose %11, [0, 2, 1] : vector<8x16x32xbf16> -> vector<8x32x16xbf16>
    %13 = vector.shape_cast %12 : vector<8x32x16xbf16> to vector<256x16xbf16>
    %c0_8 = arith.constant 0 : index
    %c0_9 = arith.constant 0 : index
    %14 = vector.load %arg5[%c0_8, %c0_9] : memref<16x16xbf16, #tpu.memory_space<vmem>>, vector<16x16xbf16>
    %cst_10 = arith.constant dense<0.000000e+00> : vector<256x16xf32>
    %15 = tpu.matmul %13, %14, %cst_10 {dimension_numbers = #tpu.dot_dimension_numbers<[1], [0], [0], [1], [0, 0, 1, 1], [], []>} : vector<256x16xbf16>, vector<16x16xbf16>, vector<256x16xf32> -> vector<256x16xf32>
    %16 = vector.shape_cast %15 : vector<256x16xf32> to vector<8x32x16xf32>
    %c0_11 = arith.constant 0 : index
    %c0_12 = arith.constant 0 : index
    %17 = vector.load %arg6[%c0_11, %c0_12] : memref<16x16xbf16, #tpu.memory_space<vmem>>, vector<16x16xbf16>
    %cst_13 = arith.constant dense<0.000000e+00> : vector<256x16xf32>
    %18 = tpu.matmul %13, %17, %cst_13 {dimension_numbers = #tpu.dot_dimension_numbers<[1], [0], [0], [1], [0, 0, 1, 1], [], []>} : vector<256x16xbf16>, vector<16x16xbf16>, vector<256x16xf32> -> vector<256x16xf32>
    %19 = vector.shape_cast %18 : vector<256x16xf32> to vector<8x32x16xf32>
    %20 = vector.extract_strided_slice %16 {offsets = [0, 0, 0], sizes = [8, 16, 16], strides = [1, 1, 1]} : vector<8x32x16xf32> to vector<8x16x16xf32>
    %21 = vector.extract_strided_slice %16 {offsets = [0, 16, 0], sizes = [8, 16, 16], strides = [1, 1, 1]} : vector<8x32x16xf32> to vector<8x16x16xf32>
    %22 = vector.extract_strided_slice %19 {offsets = [0, 0, 0], sizes = [8, 16, 16], strides = [1, 1, 1]} : vector<8x32x16xf32> to vector<8x16x16xf32>
    %23 = vector.extract_strided_slice %19 {offsets = [0, 16, 0], sizes = [8, 16, 16], strides = [1, 1, 1]} : vector<8x32x16xf32> to vector<8x16x16xf32>
    %24 = arith.subf %20, %23 : vector<8x16x16xf32>
    %25 = math.absf %24 : vector<8x16x16xf32>
    %26 = arith.addf %22, %21 : vector<8x16x16xf32>
    %27 = math.absf %26 : vector<8x16x16xf32>
    %28 = arith.addf %25, %27 : vector<8x16x16xf32>
    %c0_14 = arith.constant 0 : index
    %c0_15 = arith.constant 0 : index
    %29 = vector.load %arg8[%c0_14, %c0_15] : memref<16x16xf32, #tpu.memory_space<vmem>>, vector<16x16xf32>
    %cst_16 = arith.constant dense<0.000000e+00> : vector<16x16xf32>
    %30 = vector.multi_reduction <add>, %28, %cst_16 [0] : vector<8x16x16xf32> to vector<16x16xf32>
    %31 = arith.addf %29, %30 : vector<16x16xf32>
    %c0_17 = arith.constant 0 : index
    %c0_18 = arith.constant 0 : index
    %32 = vector.load %arg8[%c0_17, %c0_18] : memref<16x16xf32, #tpu.memory_space<vmem>>, vector<16x16xf32>
    tpu.vector_store %arg8[%c0_17, %c0_18], %31 {strides = array<i32>} : memref<16x16xf32, #tpu.memory_space<vmem>>, vector<16x16xf32>,
    %c0_i32_19 = arith.constant 0 : i32
    %33 = arith.cmpi eq, %arg1, %c0_i32_19 : i32
    %34 = arith.extui %33 : i1 to i32
    %c0_i32_20 = arith.constant 0 : i32
    %35 = arith.cmpi ne, %34, %c0_i32_20 : i32
    scf.if %35 {
      %c0_21 = arith.constant 0 : index
      %c0_22 = arith.constant 0 : index
      %36 = vector.load %arg8[%c0_21, %c0_22] : memref<16x16xf32, #tpu.memory_space<vmem>>, vector<16x16xf32>
      %37 = vector.shape_cast %36 : vector<16x16xf32> to vector<1x16x16xf32>
      %cst_23 = arith.constant dense<0.000000e+00> : vector<1xf32>
      %38 = vector.multi_reduction <add>, %37, %cst_23 [1, 2] : vector<1x16x16xf32> to vector<1xf32>
      %39 = vector.shape_cast %38 : vector<1xf32> to vector<1x1x1xf32>
      %40 = vector.extract %39[0, 0, 0] : f32 from vector<1x1x1xf32>
      %41 = vector.broadcast %40 : f32 to vector<1x1xf32>
      %42 = vector.shape_cast %41 : vector<1x1xf32> to vector<1x1x1xf32>
      %c0_24 = arith.constant 0 : index
      %c0_25 = arith.constant 0 : index
      %c0_26 = arith.constant 0 : index
      %43 = vector.load %arg7[%c0_24, %c0_25, %c0_26] : memref<1x1x1xf32, #tpu.memory_space<vmem>>, vector<1x1x1xf32>
      tpu.vector_store %arg7[%c0_24, %c0_25, %c0_26], %42 {strides = array<i32>} : memref<1x1x1xf32, #tpu.memory_space<vmem>>, vector<1x1x1xf32>,
    } else {
    }
    return
  }
  func.func @transform_0(%arg0: i32, %arg1: i32) -> (i32, i32, i32) {
    %c1_i32 = arith.constant 1 : i32
    %0 = arith.muli %arg0, %c1_i32 : i32
    %1 = arith.addi %0, %arg1 : i32
    %c0_i32 = arith.constant 0 : i32
    %c0_i32_0 = arith.constant 0 : i32
    %c0_i32_1 = arith.constant 0 : i32
    return %1, %c0_i32, %c0_i32_0 : i32, i32, i32
  }
  func.func @transform_1(%arg0: i32, %arg1: i32) -> (i32, i32, i32) {
    %c1_i32 = arith.constant 1 : i32
    %0 = arith.muli %arg0, %c1_i32 : i32
    %1 = arith.addi %0, %arg1 : i32
    %c0_i32 = arith.constant 0 : i32
    %c0_i32_0 = arith.constant 0 : i32
    %c0_i32_1 = arith.constant 0 : i32
    return %1, %c0_i32, %c0_i32_0 : i32, i32, i32
  }
  func.func @transform_2(%arg0: i32, %arg1: i32) -> (i32, i32) {
    %c0_i32 = arith.constant 0 : i32
    %c0_i32_0 = arith.constant 0 : i32
    %c0_i32_1 = arith.constant 0 : i32
    return %c0_i32, %c0_i32_0 : i32, i32
  }
  func.func @transform_3(%arg0: i32, %arg1: i32) -> (i32, i32) {
    %c0_i32 = arith.constant 0 : i32
    %c0_i32_0 = arith.constant 0 : i32
    %c0_i32_1 = arith.constant 0 : i32
    return %c0_i32, %c0_i32_0 : i32, i32
  }
  func.func @transform_4(%arg0: i32, %arg1: i32) -> (i32, i32) {
    %c0_i32 = arith.constant 0 : i32
    %c0_i32_0 = arith.constant 0 : i32
    %c0_i32_1 = arith.constant 0 : i32
    return %c0_i32, %c0_i32_0 : i32, i32
  }
  func.func @transform_5(%arg0: i32, %arg1: i32) -> (i32, i32, i32) {
    %c0_i32 = arith.constant 0 : i32
    %c0_i32_0 = arith.constant 0 : i32
    %c0_i32_1 = arith.constant 0 : i32
    return %arg0, %c0_i32, %c0_i32_0 : i32, i32, i32
  }
}

</mosaic_0001>

<bundles_post_ra>
// kernel: tpu_custom_call.1
= control target key start
LH: loop header
LB: loop body
LE: loop exit
PB: predicated region body
PF: predicated region fallthrough
CT: control target
= control target key end

     0   :  { %10 = vsyncpa [#allocation4], 0  ;;  %s1439_s0 = inlined_call_operand.hbm [shape: f32[8,16,16], index: 0, kind: input, shape index: {}]   ;;  %s1440_s1 = inlined_call_operand.hbm [shape: f32[8,16,16], index: 1, kind: input, shape index: {}]   ;;  %s1441_s2 = inlined_call_operand.hbm [shape: bf16[16,32], index: 2, kind: input, shape index: {}]   ;;  %s1442_s3 = inlined_call_operand.vmem [shape: bf16[16,16], index: 3, kind: input, shape index: {}]   ;;  %s1443_s4 = inlined_call_operand.hbm [shape: bf16[16,16], index: 4, kind: input, shape index: {}]   ;;  %s1444_s5 = inlined_call_operand.hbm [shape: f32[1,1,1], index: 5, kind: output, shape index: {}]  }
   0x1   :  { %11 = vsyncpa [#allocation7], 0 }
   0x2   :  { %12 = vsyncpa [#allocation10], 0 }
   0x3   :  { %13 = vsyncpa [#allocation5], 0  ;;  %s1267_s18 = smov [#allocation6]   ;;  %s1268_s20 = smov [#allocation3]  }
   0x4   :  { %s41_s19 = sshll.u32 %s1267_s18, 4  ;;  %s24_s21 = sshll.u32 %s1268_s20, 4  ;;  %s42_s19 = int_to_ptr.vmem [resolvable:$true] %s41_s19  ;;  %s1307_s21 = int_to_ptr.vmem [resolvable:$true] %s24_s21 }
   0x5   :  { %s1149_s24 = scalar_lea.hbm %s1440_s1, 2048 }
   0x6   :  { %p1150_p0 = scmp.ne.s32.totalorder %s1440_s1, %s1149_s24  ;;  %p1153_p1 = scmp.lt.u32.totalorder %s1149_s24, %s1440_s1 }
   0x8   :  { %p1155_p2 = pnand %p1153_p1, %p1150_p0 }
   0xa   :  { %1158 = shalt.err (!%p1155_p2)
}
   0xb   :  { %s1159_s29 = scalar_lea.vmem %s42_s19, 2048  ;;  %p1164_p4 = scmp.lt.s32.totalorder %s42_s19, %s42_s19 }
   0xc   :  { %p1160_p3 = scmp.ne.s32.totalorder %s42_s19, %s1159_s29  ;;  %p1165_p5 = scmp.lt.s32.totalorder %s1159_s29, %s1159_s29 }
   0xe   :  { %p1166_p6 = por %p1165_p5, %p1164_p4 }
  0x10   :  { %p1167_p7 = pnand %p1166_p6, %p1160_p3 }
  0x12   :  { %1170 = shalt.err (!%p1167_p7)
}
  0x13   :  { %s1269_s30 = smov 128   ;;  %s1270_s6 = smov 8  }
  0x14   :  { %47 = dma.hbm_to_vmem [thread:$0]  %s1440_s1, 2048, %s42_s19, [#allocation7], %s1269_s30, %s1269_s30, %s1270_s6  }
  0x15   :  { %s1171_s11 = scalar_lea.hbm %s1439_s0, 2048 }
  0x16   :  { %p1172_p8 = scmp.ne.s32.totalorder %s1439_s0, %s1171_s11  ;;  %p1175_p9 = scmp.lt.u32.totalorder %s1171_s11, %s1439_s0 }
  0x18   :  { %p1177_p10 = pnand %p1175_p9, %p1172_p8 }
  0x1a   :  { %1180 = shalt.err (!%p1177_p10)
}
  0x1b   :  { %s1181_s16 = scalar_lea.vmem %s1307_s21, 2048  ;;  %p1186_p12 = scmp.lt.s32.totalorder %s1307_s21, %s1307_s21 }
  0x1c   :  { %p1182_p11 = scmp.ne.s32.totalorder %s1307_s21, %s1181_s16  ;;  %p1187_p13 = scmp.lt.s32.totalorder %s1181_s16, %s1181_s16 }
  0x1e   :  { %p1188_p0 = por %p1187_p13, %p1186_p12 }
  0x20   :  { %p1189_p1 = pnand %p1188_p0, %p1182_p11 }
  0x22   :  { %1192 = shalt.err (!%p1189_p1)
}
  0x23   :  { %30 = dma.hbm_to_vmem [thread:$0]  %s1439_s0, 2048, %s1307_s21, [#allocation4], %s1269_s30, %s1269_s30, %s1270_s6  }
  0x24   :  { %s1271_s18 = smov [#allocation8]   ;;  %s1193_s23 = scalar_lea.hbm %s1441_s2, 128 }
  0x25   :  { %s53_s19 = sshll.u32 %s1271_s18, 4  ;;  %p1194_p2 = scmp.ne.s32.totalorder %s1441_s2, %s1193_s23  ;;  %s54_s19 = int_to_ptr.vmem [resolvable:$true] %s53_s19 }
  0x26   :  { %p1197_p3 = scmp.lt.u32.totalorder %s1193_s23, %s1441_s2 }
  0x28   :  { %p1199_p4 = pnand %p1197_p3, %p1194_p2 }
  0x2a   :  { %1202 = shalt.err (!%p1199_p4)
}
  0x2b   :  { %s1203_s28 = scalar_lea.vmem %s54_s19, 128  ;;  %p1208_p6 = scmp.lt.s32.totalorder %s54_s19, %s54_s19 }
  0x2c   :  { %p1204_p5 = scmp.ne.s32.totalorder %s54_s19, %s1203_s28  ;;  %p1209_p7 = scmp.lt.s32.totalorder %s1203_s28, %s1203_s28 }
  0x2e   :  { %p1210_p8 = por %p1209_p7, %p1208_p6 }
  0x30   :  { %p1211_p9 = pnand %p1210_p8, %p1204_p5 }
  0x32   :  { %1214 = shalt.err (!%p1211_p9)
}
  0x33   :  { %s1272_s0 = smov 64   ;;  %s1273_s21 = smov 4  }
  0x34   :  { %59 = dma.hbm_to_vmem [thread:$0]  %s1441_s2, 128, %s54_s19, [#allocation7], %s1272_s0, %s1272_s0, %s1273_s21  }
  0x35   :  { %s1274_s6 = smov [#allocation9]   ;;  %s1215_s10 = scalar_lea.hbm %s1443_s4, 128 }
  0x36   :  { %s67_s7 = sshll.u32 %s1274_s6, 4  ;;  %p1216_p10 = scmp.ne.s32.totalorder %s1443_s4, %s1215_s10  ;;  %s68_s7 = int_to_ptr.vmem [resolvable:$true] %s67_s7 }
  0x37   :  { %p1219_p11 = scmp.lt.u32.totalorder %s1215_s10, %s1443_s4 }
  0x39   :  { %p1221_p12 = pnand %p1219_p11, %p1216_p10 }
  0x3b   :  { %1224 = shalt.err (!%p1221_p12)
}
  0x3c   :  { %s1225_s15 = scalar_lea.vmem %s68_s7, 128  ;;  %p1230_p0 = scmp.lt.s32.totalorder %s68_s7, %s68_s7 }
  0x3d   :  { %p1226_p13 = scmp.ne.s32.totalorder %s68_s7, %s1225_s15  ;;  %p1231_p1 = scmp.lt.s32.totalorder %s1225_s15, %s1225_s15 }
  0x3f   :  { %p1232_p2 = por %p1231_p1, %p1230_p0 }
  0x41   :  { %p1233_p3 = pnand %p1232_p2, %p1226_p13 }
  0x43   :  { %1236 = shalt.err (!%p1233_p3)
}
  0x44   :  { %73 = dma.hbm_to_vmem [thread:$0]  %s1443_s4, 128, %s68_s7, [#allocation10], %s1272_s0, %s1272_s0, %s1273_s21  }
  0x45   :  { %1259 = dma.done.wait [#allocation4], 2048  }
  0x46   :  { %1260 = vsyncadd [#allocation4], 4294965248 }
  0x47   :  { %1261 = dma.done.wait [#allocation7], 2176  }
  0x48   :  { %1262 = vsyncadd [#allocation7], 4294965120 }
  0x49   :  { %1263 = dma.done.wait [#allocation10], 128  }
  0x4a   :  { %1264 = vsyncadd [#allocation10], 4294967168  ;;  %v1146_v0 = vld [vmem:[#allocation8] sm:$0xff]   ;;  %v99_v2 = vld [vmem:[#allocation3 + $0x8] sm:$0xff]  ;;  %vm95_vm0 = vcmask 130048   ;;  %vm940_vm1 = vcmask 0  }
  0x4b   :  { %v98_v1 = vld [vmem:[#allocation3] sm:$0xff]  ;;  %1045 = vmatprep.subr.bf16.mxu0 %v1146_v0  ;;  %v115_v4 = vld [vmem:[#allocation6 + $0x8] sm:$0xff]  ;;  %v100_v6 = vld [vmem:[#allocation3 + $0x10] sm:$0xff]  ;;  %1131 = vmatprep.subr.bf16.mxu1 %v1146_v0 }
  0x4c   :  { %v114_v3 = vld [vmem:[#allocation6] sm:$0xff]  ;;  %v101_v7 = vld [vmem:[#allocation3 + $0x18] sm:$0xff]  ;;  %1046 = vmatpush3.bf16.msra.mxu0 %v1146_v0  ;;  %v131_v8 = vsub.f32 %v99_v2, %v115_v4  ;;  %v116_v9 = vld [vmem:[#allocation6 + $0x10] sm:$0xff]  ;;  %1132 = vmatpush3.bf16.msra.mxu1 %v1146_v0 }
  0x4d   :  { %v130_v5 = vsub.f32 %v98_v1, %v114_v3  ;;  %v117_v10 = vld [vmem:[#allocation6 + $0x18] sm:$0xff]  ;;  %v102_v11 = vld [vmem:[#allocation3 + $0x20] sm:$0xff]  ;;  %v132_v12 = vsub.f32 %v100_v6, %v116_v9  ;;  %v103_v14 = vld [vmem:[#allocation3 + $0x28] sm:$0xff] }
  0x4e   :  { %v133_v13 = vsub.f32 %v101_v7, %v117_v10  ;;  %v118_v15 = vld [vmem:[#allocation6 + $0x20] sm:$0xff]  ;;  %v119_v16 = vld [vmem:[#allocation6 + $0x28] sm:$0xff]  ;;  %v104_v20 = vld [vmem:[#allocation3 + $0x30] sm:$0xff] }
  0x4f   :  { %v146_v17 = vpack.c.bf16 %v131_v8, %v130_v5  ;;  %v134_v18 = vsub.f32 %v102_v11, %v118_v15  ;;  %v135_v19 = vsub.f32 %v103_v14, %v119_v16  ;;  %v105_v21 = vld [vmem:[#allocation3 + $0x38] sm:$0xff]  ;;  %v120_v22 = vld [vmem:[#allocation6 + $0x30] sm:$0xff]  ;;  %v106_v25 = vld [vmem:[#allocation3 + $0x40] sm:$0xff] }
  0x50   :  { %v147_v23 = vpack.c.bf16 %v133_v13, %v132_v12  ;;  %v121_v24 = vld [vmem:[#allocation6 + $0x38] sm:$0xff]  ;;  %v107_v26 = vld [vmem:[#allocation3 + $0x48] sm:$0xff]  ;;  %v122_v28 = vld [vmem:[#allocation6 + $0x40] sm:$0xff]  ;;  %v136_v31 = vsub.f32 %v104_v20, %v120_v22 }
  0x51   :  { %1047 = vmatprep.mubr.msk.bf16.mxu0 %vm95_vm0, %v146_v17  ;;  %v148_v27 = vpack.c.bf16 %v135_v19, %v134_v18  ;;  %v123_v29 = vld [vmem:[#allocation6 + $0x48] sm:$0xff]  ;;  %v108_v30 = vld [vmem:[#allocation3 + $0x50] sm:$0xff]  ;;  %v137_v32 = vsub.f32 %v105_v21, %v121_v24  ;;  %v138_v33 = vsub.f32 %v106_v25, %v122_v28  ;;  %v109_v35 = vld [vmem:[#allocation3 + $0x58] sm:$0xff] }
  0x52   :  { %1048 = vmatmul.mubr.msk.bf16.vlgmr.msra.gmra.mrb[0].mxu0 %vm95_vm0, %v147_v23  ;;  %v139_v34 = vsub.f32 %v107_v26, %v123_v29  ;;  %v124_v36 = vld [vmem:[#allocation6 + $0x50] sm:$0xff]  ;;  %v125_v37 = vld [vmem:[#allocation6 + $0x58] sm:$0xff]  ;;  %v110_v40 = vld [vmem:[#allocation3 + $0x60] sm:$0xff] }
  0x53   :  { %1051 = vmatprep.mubr.msk.bf16.mxu0 %vm95_vm0, %v148_v27  ;;  %v140_v38 = vsub.f32 %v108_v30, %v124_v36  ;;  %v141_v39 = vsub.f32 %v109_v35, %v125_v37  ;;  %v111_v41 = vld [vmem:[#allocation3 + $0x68] sm:$0xff]  ;;  %v126_v42 = vld [vmem:[#allocation6 + $0x60] sm:$0xff]  ;;  %v112_v46 = vld [vmem:[#allocation3 + $0x70] sm:$0xff]  ;;  %v149_v52 = vpack.c.bf16 %v137_v32, %v136_v31  ;;  %v1275_v35 = vmov 0.0  }
  0x54   :  { %v150_v43 = vpack.c.bf16 %v139_v34, %v138_v33  ;;  %v127_v44 = vld [vmem:[#allocation6 + $0x68] sm:$0xff]  ;;  %v142_v45 = vsub.f32 %v110_v40, %v126_v42  ;;  %v113_v47 = vld [vmem:[#allocation3 + $0x78] sm:$0xff]  ;;  %v128_v50 = vld [vmem:[#allocation6 + $0x70] sm:$0xff]  ;;  %96 = vst.msk [vmem:[#allocation2] sm:$0xff] %vm95_vm0, %v1275_v35 }
  0x55   :  { %v151_v48 = vpack.c.bf16 %v141_v39, %v140_v38  ;;  %v143_v49 = vsub.f32 %v111_v41, %v127_v44  ;;  %v129_v51 = vld [vmem:[#allocation6 + $0x78] sm:$0xff]  ;;  %v144_v54 = vsub.f32 %v112_v46, %v128_v50  ;;  %v1147_v57 = vld [vmem:[%s1442_s3] sm:$0xff]   ;;  %v1148_v58 = vld [vmem:[#allocation9] sm:$0xff]   ;;  %97 = vst.msk [vmem:[#allocation2 + $0x8] sm:$0xff] %vm95_vm0, %v1275_v35  ;;  %s1276_s3 = smov [#allocation11]  }
  0x56   :  { %1055 = vmatprep.mubr.msk.bf16.mxu1 %vm95_vm0, %v150_v43  ;;  %v145_v55 = vsub.f32 %v113_v47, %v129_v51  ;;  %1063 = vmatprep.subr.bf16.mxu1 %v1147_v57  ;;  %s948_s17 = sshll.u32 %s1276_s3, 4  ;;  %s949_s17 = int_to_ptr.vmem [resolvable:$true] %s948_s17 }
  0x57   :  { %1056 = vmatmul.mubr.msk.bf16.vlgmr.msra.gmra.mrb[0].mxu1 %vm95_vm0, %v151_v48  ;;  %v152_v53 = vpack.c.bf16 %v143_v49, %v142_v45  ;;  %1097 = vmatprep.subr.bf16.mxu0 %v1148_v58  ;;  %s1237_s19 = scalar_lea.vmem %s949_s17, 16  ;;  %s1241_s20 = scalar_lea.vmem %s949_s17, 32 }
  0x58   :  { %v153_v56 = vpack.c.bf16 %v145_v55, %v144_v54  ;;  %1064 = vmatpush3.bf16.msra.mxu1 %v1147_v57  ;;  %1098 = vmatpush3.bf16.msra.mxu0 %v1148_v58  ;;  %p1238_p4 = scmp.ne.s32.totalorder %s949_s17, %s1237_s19  ;;  %p1242_p5 = scmp.lt.s32.totalorder %s949_s17, %s949_s17 }
  0x59   :  { %1059 = vmatprep.mubr.msk.bf16.mxu1 %vm95_vm0, %v152_v53  ;;  %p1243_p6 = scmp.lt.s32.totalorder %s1241_s20, %s1237_s19 }
  0x5a   :  { %1052 = vmatmul.mubr.msk.bf16.gmra.mrb[4].mxu0 %vm95_vm0, %v149_v52 }
  0x5b   :  { %p1244_p7 = por %p1243_p6, %p1242_p5 }
  0x5d   :  { %p1245_p8 = pnand %p1244_p7, %p1238_p4 }
  0x5f   :  { %1060 = vmatmul.mubr.msk.bf16.gmra.mrb[4].mxu1 %vm95_vm0, %v153_v56 }
 0x125   :  { %v1049_v59 = vpop.f32.mrb[0].mxu0 }
 0x126   :  { %v221_v60 = vpop.f32.mrb[1].mxu0 }
 0x127   :  { %v1050_v61 = vpop.f32.mrb[2].mxu0 }
 0x128   :  { %v285_v62 = vpack.c.bf16 %v1050_v61, %v1049_v59  ;;  %v224_v63 = vpop.f32.mrb[3].mxu0 }
 0x129   :  { %v284_v0 = vpack.c.bf16 %v224_v63, %v221_v60 }
 0x12a   :  { %v1057_v1 = vpop.f32.mrb[0].mxu1 }
 0x12b   :  { %292 = vxpose.xlu0.c.b16.start.end [1/1] (short) (narrow) %v284_v0, 32  ;;  %v253_v2 = vpop.f32.mrb[1].mxu1 }
 0x12c   :  { %v1058_v3 = vpop.f32.mrb[2].mxu1 }
 0x12d   :  { %v1053_v4 = vpop.f32.mrb[4].mxu0  ;;  %v289_v5 = vpack.c.bf16 %v1058_v3, %v1057_v1  ;;  %v256_v6 = vpop.f32.mrb[3].mxu1 }
 0x12e   :  { %v237_v7 = vpop.f32.mrb[5].mxu0  ;;  %v288_v8 = vpack.c.bf16 %v256_v6, %v253_v2 }
 0x12f   :  { %v1054_v9 = vpop.f32.mrb[6].mxu0 }
 0x130   :  { %v287_v10 = vpack.c.bf16 %v1054_v9, %v1053_v4  ;;  %308 = vxpose.xlu0.c.b16.start.end [1/1] (short) (narrow) %v285_v62, 32  ;;  %v240_v11 = vpop.f32.mrb[7].mxu0 }
 0x131   :  { %v286_v12 = vpack.c.bf16 %v240_v11, %v237_v7 }
 0x132   :  { %v1061_v13 = vpop.f32.mrb[4].mxu1 }
 0x133   :  { %324 = vxpose.xlu1.c.b16.start.end [1/1] (short) (narrow) %v286_v12, 32  ;;  %v269_v14 = vpop.f32.mrb[5].mxu1 }
 0x134   :  { %v1062_v15 = vpop.f32.mrb[6].mxu1 }
 0x135   :  { %356 = vxpose.xlu0.c.b16.start.end [1/1] (short) (narrow) %v288_v8, 32  ;;  %v291_v16 = vpack.c.bf16 %v1062_v15, %v1061_v13  ;;  %v272_v17 = vpop.f32.mrb[7].mxu1 }
 0x136   :  { %v290_v18 = vpack.c.bf16 %v272_v17, %v269_v14 }
 0x138   :  { %340 = vxpose.xlu1.c.b16.start.end [1/1] (short) (narrow) %v287_v10, 32 }
 0x13a   :  { %388 = vxpose.xlu0.c.b16.start.end [1/1] (short) (narrow) %v290_v18, 32 }
 0x13d   :  { %372 = vxpose.xlu1.c.b16.start.end [1/1] (short) (narrow) %v289_v5, 32 }
 0x142   :  { %404 = vxpose.xlu1.c.b16.start.end [1/1] (short) (narrow) %v291_v16, 32 }
 0x191   :  { %v300_v19 = vpop.trf.xlu0 }
 0x192   :  { %1065 = vmatprep.mubr.msk.bf16.mxu1 %vm95_vm0, %v300_v19  ;;  %1099 = vmatprep.mubr.msk.bf16.mxu0 %vm95_vm0, %v300_v19 }
 0x195   :  { %v301_v20 = vpop.trf.xlu0 }
 0x196   :  { %1066 = vmatmul.mubr.msk.bf16.vlgmr.msra.gmra.mrb[8].mxu1 %vm95_vm0, %v301_v20  ;;  %1100 = vmatmul.mubr.msk.bf16.vlgmr.msra.gmra.mrb[8].mxu0 %vm95_vm0, %v301_v20 }
 0x199   :  { %v316_v21 = vpop.trf.xlu0  ;;  %v332_v22 = vpop.trf.xlu1 }
 0x19a   :  { %1069 = vmatprep.mubr.msk.bf16.mxu1 %vm95_vm0, %v316_v21  ;;  %1103 = vmatprep.mubr.msk.bf16.mxu0 %vm95_vm0, %v316_v21 }
 0x19d   :  { %v317_v23 = vpop.trf.xlu0  ;;  %v333_v24 = vpop.trf.xlu1 }
 0x19e   :  { %1070 = vmatmul.mubr.msk.bf16.gmra.mrb[12].mxu1 %vm95_vm0, %v317_v23  ;;  %1104 = vmatmul.mubr.msk.bf16.gmra.mrb[12].mxu0 %vm95_vm0, %v317_v23 }
 0x19f   :  { %1073 = vmatprep.mubr.msk.bf16.mxu1 %vm95_vm0, %v332_v22  ;;  %1107 = vmatprep.mubr.msk.bf16.mxu0 %vm95_vm0, %v332_v22 }
 0x1a1   :  { %v348_v25 = vpop.trf.xlu1  ;;  %v364_v27 = vpop.trf.xlu0 }
 0x1a5   :  { %v349_v26 = vpop.trf.xlu1  ;;  %v365_v28 = vpop.trf.xlu0 }
 0x1a6   :  { %1074 = vmatmul.mubr.msk.bf16.gmra.mrb[16].mxu1 %vm95_vm0, %v333_v24  ;;  %1108 = vmatmul.mubr.msk.bf16.gmra.mrb[16].mxu0 %vm95_vm0, %v333_v24 }
 0x1a7   :  { %1077 = vmatprep.mubr.msk.bf16.mxu1 %vm95_vm0, %v348_v25  ;;  %1111 = vmatprep.mubr.msk.bf16.mxu0 %vm95_vm0, %v348_v25 }
 0x1a9   :  { %v380_v29 = vpop.trf.xlu1  ;;  %v396_v31 = vpop.trf.xlu0 }
 0x1ad   :  { %v381_v30 = vpop.trf.xlu1  ;;  %v397_v32 = vpop.trf.xlu0 }
 0x1ae   :  { %1078 = vmatmul.mubr.msk.bf16.gmra.mrb[20].mxu1 %vm95_vm0, %v349_v26  ;;  %1112 = vmatmul.mubr.msk.bf16.gmra.mrb[20].mxu0 %vm95_vm0, %v349_v26 }
 0x1af   :  { %1081 = vmatprep.mubr.msk.bf16.mxu1 %vm95_vm0, %v364_v27  ;;  %1115 = vmatprep.mubr.msk.bf16.mxu0 %vm95_vm0, %v364_v27 }
 0x1b1   :  { %v412_v33 = vpop.trf.xlu1 }
 0x1b5   :  { %v413_v34 = vpop.trf.xlu1 }
 0x1b6   :  { %1082 = vmatmul.mubr.msk.bf16.gmra.mrb[24].mxu1 %vm95_vm0, %v365_v28  ;;  %1116 = vmatmul.mubr.msk.bf16.gmra.mrb[24].mxu0 %vm95_vm0, %v365_v28 }
 0x1b7   :  { %1085 = vmatprep.mubr.msk.bf16.mxu1 %vm95_vm0, %v380_v29  ;;  %1119 = vmatprep.mubr.msk.bf16.mxu0 %vm95_vm0, %v380_v29 }
 0x1be   :  { %1086 = vmatmul.mubr.msk.bf16.gmra.mrb[28].mxu1 %vm95_vm0, %v381_v30  ;;  %1120 = vmatmul.mubr.msk.bf16.gmra.mrb[28].mxu0 %vm95_vm0, %v381_v30 }
 0x1bf   :  { %1089 = vmatprep.mubr.msk.bf16.mxu1 %vm95_vm0, %v396_v31  ;;  %1123 = vmatprep.mubr.msk.bf16.mxu0 %vm95_vm0, %v396_v31 }
 0x1c6   :  { %1090 = vmatmul.mubr.msk.bf16.gmra.mrb[32].mxu1 %vm95_vm0, %v397_v32  ;;  %1124 = vmatmul.mubr.msk.bf16.gmra.mrb[32].mxu0 %vm95_vm0, %v397_v32 }
 0x1c7   :  { %1093 = vmatprep.mubr.msk.bf16.mxu1 %vm95_vm0, %v412_v33  ;;  %1127 = vmatprep.mubr.msk.bf16.mxu0 %vm95_vm0, %v412_v33 }
 0x1ce   :  { %1094 = vmatmul.mubr.msk.bf16.gmra.mrb[36].mxu1 %vm95_vm0, %v413_v34  ;;  %1128 = vmatmul.mubr.msk.bf16.gmra.mrb[36].mxu0 %vm95_vm0, %v413_v34 }
 0x269   :  { %v1067_v36 = vpop.f32.mrb[8].mxu1  ;;  %v1101_v37 = vpop.f32.mrb[8].mxu0 }
 0x26a   :  { %v510_v38 = vpop.f32.mrb[9].mxu1  ;;  %v679_v39 = vpop.f32.mrb[9].mxu0 }
 0x26b   :  { %v806_v40 = vsub.f32 %v510_v38, %v1101_v37  ;;  %v838_v41 = vadd.f32 %v1067_v36, %v679_v39  ;;  %v1068_v42 = vpop.f32.mrb[10].mxu1  ;;  %v1102_v43 = vpop.f32.mrb[10].mxu0 }
 0x26c   :  { %v513_v44 = vpop.f32.mrb[11].mxu1  ;;  %v682_v45 = vpop.f32.mrb[11].mxu0 }
 0x26d   :  { %v822_v46 = vand.u32 2147483647, %v806_v40  ;;  %v854_v47 = vand.u32 2147483647, %v838_v41  ;;  %v807_v48 = vsub.f32 %v513_v44, %v1102_v43  ;;  %v839_v49 = vadd.f32 %v1068_v42, %v682_v45 }
 0x26f   :  { %v870_v50 = vadd.f32 %v854_v47, %v822_v46  ;;  %v823_v51 = vand.u32 2147483647, %v807_v48  ;;  %v855_v52 = vand.u32 2147483647, %v839_v49 }
 0x271   :  { %v871_v53 = vadd.f32 %v855_v52, %v823_v51  ;;  %v1071_v54 = vpop.f32.mrb[12].mxu1  ;;  %v1105_v55 = vpop.f32.mrb[12].mxu0  ;;  %v888_v7 = vsel %vm95_vm0, %v870_v50, 0.0 }
 0x272   :  { %v526_v56 = vpop.f32.mrb[13].mxu1  ;;  %v695_v57 = vpop.f32.mrb[13].mxu0 }
 0x273   :  { %v808_v58 = vsub.f32 %v526_v56, %v1105_v55  ;;  %v840_v59 = vadd.f32 %v1071_v54, %v695_v57  ;;  %v1072_v60 = vpop.f32.mrb[14].mxu1  ;;  %v1106_v61 = vpop.f32.mrb[14].mxu0  ;;  %v903_v15 = vsel %vm95_vm0, %v871_v53, 0.0 }
 0x274   :  { %v529_v62 = vpop.f32.mrb[15].mxu1  ;;  %v698_v63 = vpop.f32.mrb[15].mxu0 }
 0x275   :  { %v824_v0 = vand.u32 2147483647, %v808_v58  ;;  %v856_v1 = vand.u32 2147483647, %v840_v59  ;;  %v809_v2 = vsub.f32 %v529_v62, %v1106_v61  ;;  %v841_v3 = vadd.f32 %v1072_v60, %v698_v63 }
 0x277   :  { %v872_v4 = vadd.f32 %v856_v1, %v824_v0  ;;  %v825_v5 = vand.u32 2147483647, %v809_v2  ;;  %v857_v6 = vand.u32 2147483647, %v841_v3 }
 0x279   :  { %v889_v8 = vsel %vm95_vm0, %v872_v4, 0.0  ;;  %v873_v9 = vadd.f32 %v857_v6, %v825_v5  ;;  %v1075_v10 = vpop.f32.mrb[16].mxu1  ;;  %v1109_v11 = vpop.f32.mrb[16].mxu0 }
 0x27a   :  { %v890_v12 = vadd.f32 %v889_v8, %v888_v7  ;;  %v542_v13 = vpop.f32.mrb[17].mxu1  ;;  %v711_v14 = vpop.f32.mrb[17].mxu0 }
 0x27b   :  { %v904_v16 = vsel %vm95_vm0, %v873_v9, 0.0  ;;  %v810_v17 = vsub.f32 %v542_v13, %v1109_v11  ;;  %v842_v18 = vadd.f32 %v1075_v10, %v711_v14  ;;  %v1076_v19 = vpop.f32.mrb[18].mxu1  ;;  %v1110_v20 = vpop.f32.mrb[18].mxu0 }
 0x27c   :  { %v905_v21 = vadd.f32 %v904_v16, %v903_v15  ;;  %v545_v22 = vpop.f32.mrb[19].mxu1  ;;  %v714_v23 = vpop.f32.mrb[19].mxu0 }
 0x27d   :  { %v826_v24 = vand.u32 2147483647, %v810_v17  ;;  %v858_v25 = vand.u32 2147483647, %v842_v18  ;;  %v811_v26 = vsub.f32 %v545_v22, %v1110_v20  ;;  %v843_v27 = vadd.f32 %v1076_v19, %v714_v23 }
 0x27f   :  { %v874_v28 = vadd.f32 %v858_v25, %v826_v24  ;;  %v827_v29 = vand.u32 2147483647, %v811_v26  ;;  %v859_v30 = vand.u32 2147483647, %v843_v27 }
 0x281   :  { %v891_v31 = vsel %vm95_vm0, %v874_v28, 0.0  ;;  %v875_v32 = vadd.f32 %v859_v30, %v827_v29  ;;  %v1079_v33 = vpop.f32.mrb[20].mxu1  ;;  %v1113_v34 = vpop.f32.mrb[20].mxu0 }
 0x282   :  { %v892_v35 = vadd.f32 %v891_v31, %v890_v12  ;;  %v558_v36 = vpop.f32.mrb[21].mxu1  ;;  %v727_v37 = vpop.f32.mrb[21].mxu0 }
 0x283   :  { %v906_v38 = vsel %vm95_vm0, %v875_v32, 0.0  ;;  %v812_v39 = vsub.f32 %v558_v36, %v1113_v34  ;;  %v844_v40 = vadd.f32 %v1079_v33, %v727_v37  ;;  %v1080_v41 = vpop.f32.mrb[22].mxu1  ;;  %v1114_v42 = vpop.f32.mrb[22].mxu0 }
 0x284   :  { %v907_v43 = vadd.f32 %v906_v38, %v905_v21  ;;  %v561_v44 = vpop.f32.mrb[23].mxu1  ;;  %v730_v45 = vpop.f32.mrb[23].mxu0 }
 0x285   :  { %v828_v46 = vand.u32 2147483647, %v812_v39  ;;  %v860_v47 = vand.u32 2147483647, %v844_v40  ;;  %v813_v48 = vsub.f32 %v561_v44, %v1114_v42  ;;  %v845_v49 = vadd.f32 %v1080_v41, %v730_v45 }
 0x287   :  { %v876_v50 = vadd.f32 %v860_v47, %v828_v46  ;;  %v829_v51 = vand.u32 2147483647, %v813_v48  ;;  %v861_v52 = vand.u32 2147483647, %v845_v49 }
 0x289   :  { %v893_v53 = vsel %vm95_vm0, %v876_v50, 0.0  ;;  %v877_v54 = vadd.f32 %v861_v52, %v829_v51  ;;  %v1083_v55 = vpop.f32.mrb[24].mxu1  ;;  %v1117_v56 = vpop.f32.mrb[24].mxu0 }
 0x28a   :  { %v894_v57 = vadd.f32 %v893_v53, %v892_v35  ;;  %v574_v58 = vpop.f32.mrb[25].mxu1  ;;  %v743_v59 = vpop.f32.mrb[25].mxu0 }
 0x28b   :  { %v908_v60 = vsel %vm95_vm0, %v877_v54, 0.0  ;;  %v814_v61 = vsub.f32 %v574_v58, %v1117_v56  ;;  %v846_v62 = vadd.f32 %v1083_v55, %v743_v59  ;;  %v1084_v63 = vpop.f32.mrb[26].mxu1  ;;  %v1118_v0 = vpop.f32.mrb[26].mxu0 }
 0x28c   :  { %v909_v1 = vadd.f32 %v908_v60, %v907_v43  ;;  %v577_v2 = vpop.f32.mrb[27].mxu1  ;;  %v746_v3 = vpop.f32.mrb[27].mxu0 }
 0x28d   :  { %v830_v4 = vand.u32 2147483647, %v814_v61  ;;  %v862_v5 = vand.u32 2147483647, %v846_v62  ;;  %v815_v6 = vsub.f32 %v577_v2, %v1118_v0  ;;  %v847_v7 = vadd.f32 %v1084_v63, %v746_v3 }
 0x28f   :  { %v878_v8 = vadd.f32 %v862_v5, %v830_v4  ;;  %v831_v9 = vand.u32 2147483647, %v815_v6  ;;  %v863_v10 = vand.u32 2147483647, %v847_v7 }
 0x291   :  { %v895_v11 = vsel %vm95_vm0, %v878_v8, 0.0  ;;  %v879_v12 = vadd.f32 %v863_v10, %v831_v9  ;;  %v1087_v13 = vpop.f32.mrb[28].mxu1  ;;  %v1121_v14 = vpop.f32.mrb[28].mxu0 }
 0x292   :  { %v896_v15 = vadd.f32 %v895_v11, %v894_v57  ;;  %v590_v16 = vpop.f32.mrb[29].mxu1  ;;  %v759_v17 = vpop.f32.mrb[29].mxu0 }
 0x293   :  { %v910_v18 = vsel %vm95_vm0, %v879_v12, 0.0  ;;  %v816_v19 = vsub.f32 %v590_v16, %v1121_v14  ;;  %v848_v20 = vadd.f32 %v1087_v13, %v759_v17  ;;  %v1088_v21 = vpop.f32.mrb[30].mxu1  ;;  %v1122_v22 = vpop.f32.mrb[30].mxu0  ;;  %v886_v13 = vld [vmem:[#allocation2] sm:$0xff]  ;;  %v887_v17 = vld [vmem:[#allocation2 + $0x8] sm:$0xff] }
 0x294   :  { %v911_v23 = vadd.f32 %v910_v18, %v909_v1  ;;  %v593_v24 = vpop.f32.mrb[31].mxu1  ;;  %v762_v25 = vpop.f32.mrb[31].mxu0 }
 0x295   :  { %v832_v26 = vand.u32 2147483647, %v816_v19  ;;  %v864_v27 = vand.u32 2147483647, %v848_v20  ;;  %v817_v28 = vsub.f32 %v593_v24, %v1122_v22  ;;  %v849_v29 = vadd.f32 %v1088_v21, %v762_v25 }
 0x297   :  { %v880_v30 = vadd.f32 %v864_v27, %v832_v26  ;;  %v833_v31 = vand.u32 2147483647, %v817_v28  ;;  %v865_v32 = vand.u32 2147483647, %v849_v29 }
 0x299   :  { %v897_v33 = vsel %vm95_vm0, %v880_v30, 0.0  ;;  %v881_v34 = vadd.f32 %v865_v32, %v833_v31  ;;  %v1091_v35 = vpop.f32.mrb[32].mxu1  ;;  %v1125_v36 = vpop.f32.mrb[32].mxu0 }
 0x29a   :  { %v898_v37 = vadd.f32 %v897_v33, %v896_v15  ;;  %v606_v38 = vpop.f32.mrb[33].mxu1  ;;  %v775_v39 = vpop.f32.mrb[33].mxu0 }
 0x29b   :  { %v912_v40 = vsel %vm95_vm0, %v881_v34, 0.0  ;;  %v818_v41 = vsub.f32 %v606_v38, %v1125_v36  ;;  %v850_v42 = vadd.f32 %v1091_v35, %v775_v39  ;;  %v1092_v43 = vpop.f32.mrb[34].mxu1  ;;  %v1126_v44 = vpop.f32.mrb[34].mxu0 }
 0x29c   :  { %v913_v45 = vadd.f32 %v912_v40, %v911_v23  ;;  %v609_v46 = vpop.f32.mrb[35].mxu1  ;;  %v778_v47 = vpop.f32.mrb[35].mxu0 }
 0x29d   :  { %v834_v48 = vand.u32 2147483647, %v818_v41  ;;  %v866_v49 = vand.u32 2147483647, %v850_v42  ;;  %v819_v50 = vsub.f32 %v609_v46, %v1126_v44  ;;  %v851_v51 = vadd.f32 %v1092_v43, %v778_v47 }
 0x29f   :  { %v882_v52 = vadd.f32 %v866_v49, %v834_v48  ;;  %v835_v53 = vand.u32 2147483647, %v819_v50  ;;  %v867_v54 = vand.u32 2147483647, %v851_v51 }
 0x2a1   :  { %v899_v55 = vsel %vm95_vm0, %v882_v52, 0.0  ;;  %v883_v56 = vadd.f32 %v867_v54, %v835_v53  ;;  %v1095_v57 = vpop.f32.mrb[36].mxu1  ;;  %v1129_v58 = vpop.f32.mrb[36].mxu0 }
 0x2a2   :  { %v900_v59 = vadd.f32 %v899_v55, %v898_v37  ;;  %v622_v60 = vpop.f32.mrb[37].mxu1  ;;  %v791_v61 = vpop.f32.mrb[37].mxu0 }
 0x2a3   :  { %v914_v62 = vsel %vm95_vm0, %v883_v56, 0.0  ;;  %v820_v63 = vsub.f32 %v622_v60, %v1129_v58  ;;  %v852_v0 = vadd.f32 %v1095_v57, %v791_v61  ;;  %v1096_v1 = vpop.f32.mrb[38].mxu1  ;;  %v1130_v2 = vpop.f32.mrb[38].mxu0 }
 0x2a4   :  { %v915_v3 = vadd.f32 %v914_v62, %v913_v45  ;;  %v625_v4 = vpop.f32.mrb[39].mxu1  ;;  %v794_v5 = vpop.f32.mrb[39].mxu0 }
 0x2a5   :  { %v836_v6 = vand.u32 2147483647, %v820_v63  ;;  %v868_v7 = vand.u32 2147483647, %v852_v0  ;;  %v821_v8 = vsub.f32 %v625_v4, %v1130_v2  ;;  %v853_v9 = vadd.f32 %v1096_v1, %v794_v5 }
 0x2a7   :  { %v884_v10 = vadd.f32 %v868_v7, %v836_v6  ;;  %v837_v11 = vand.u32 2147483647, %v821_v8  ;;  %v869_v12 = vand.u32 2147483647, %v853_v9 }
 0x2a9   :  { %v901_v14 = vsel %vm95_vm0, %v884_v10, 0.0  ;;  %v885_v15 = vadd.f32 %v869_v12, %v837_v11 }
 0x2aa   :  { %v902_v16 = vadd.f32 %v901_v14, %v900_v59 }
 0x2ab   :  { %v916_v18 = vsel %vm95_vm0, %v885_v15, 0.0 }
 0x2ac   :  { %v918_v19 = vadd.f32 %v902_v16, %v886_v13  ;;  %v917_v20 = vadd.f32 %v916_v18, %v915_v3 }
 0x2ae   :  { %920 = vst.msk [vmem:[#allocation2] sm:$0xff] %vm95_vm0, %v918_v19  ;;  %v919_v21 = vadd.f32 %v917_v20, %v887_v17 }
 0x2b0   :  { %921 = vst.msk [vmem:[#allocation2 + $0x8] sm:$0xff] %vm95_vm0, %v919_v21 }
 0x2b5   :  { %v925_v22 = vld [vmem:[#allocation2] sm:$0xff] }
 0x2b6   :  { %v927_v24 = vsel %vm95_vm0, %v925_v22, 0.0 }
 0x2b7   :  { %v926_v23 = vld [vmem:[#allocation2 + $0x8] sm:$0xff] }
 0x2b8   :  { %v928_v25 = vsel %vm95_vm0, %v926_v23, 0.0 }
 0x2b9   :  { %v929_v26 = vadd.f32 %v928_v25, %v927_v24 }
 0x2bb   :  { %930 = vadd.xlane.f32.xlu0 %v929_v26 }
 0x348   :  { %v931_v27 = vpop.xlane.xlu0 %930 }
 0x349   :  { %v932_v28 = vrot.slane %v931_v27, 4 }
 0x34b   :  { %v933_v29 = vadd.f32 %v932_v28, %v931_v27 }
 0x34d   :  { %v934_v30 = vrot.slane %v933_v29, 2 }
 0x34f   :  { %v935_v31 = vadd.f32 %v934_v30, %v933_v29 }
 0x351   :  { %v936_v32 = vrot.slane %v935_v31, 1 }
 0x353   :  { %v937_v33 = vadd.f32 %v936_v32, %v935_v31 }
 0x355   :  { %1133 = vpush %v937_v33 }
 0x386   :  { %s1134_s18 = spop %1133 }
 0x387   :  { %v939_v34 = vstv %s1134_s18 }
 0x388   :  { %941 = vst.msk [vmem:[#allocation11] sm:$0x1] %vm940_vm1, %v939_v34 }
 0x389   :  { %1248 = shalt.err (!%p1245_p8)
}
 0x38a   :  { %s1249_s24 = scalar_lea.hbm %s1444_s5, 16 }
 0x38b   :  { %p1250_p9 = scmp.ne.s32.totalorder %s1444_s5, %s1249_s24  ;;  %p1253_p10 = scmp.lt.u32.totalorder %s1249_s24, %s1444_s5 }
 0x38d   :  { %p1255_p11 = pnand %p1253_p10, %p1250_p9 }
 0x38f   :  { %1258 = shalt.err (!%p1255_p11)
}
 0x390   :  { %951 = dma.vmem_to_hbm [thread:$0]  %s949_s17, 16, %s1444_s5, [#allocation5]  }
 0x391   :  { %1265 = dma.done.wait [#allocation5], 16  }
 0x392   :  { %1266 = vsyncadd [#allocation5], 4294967280 }
 0x393   :  { %955 = vsyncpa [#allocation4], 1 }
 0x394   :  { %956 = vsyncpa [#allocation7], 1 }
 0x395   :  { %957 = vsyncpa [#allocation10], 1 }
 0x396   :  { %958 = vsyncpa [#allocation5], 1 }

</bundles_post_ra>
